<compile_context>
chip_gen: v5e
topology: v5e:2x2
jax: 0.10.0
libtpu: 0.0.40
codegen_flags: <defaults>
</compile_context>

<pallas_src>
import functools

import jax
import jax.numpy as jnp
from jax.experimental import pallas as pl
from jax.experimental.pallas import tpu as pltpu

d_model = 128
d_ff = 512
LN_EPS = 1e-5


def ffn_kernel(x_ref, w1_ref, w2_ref, o_ref):
    # x_ref: (TM, d_model) in the input dtype; w1_ref/w2_ref: bf16, VMEM-resident.
    x = x_ref[...]
    x_f32 = x.astype(jnp.float32)

    # FC1 + ReLU: bf16 MXU operands, f32 accumulation. ReLU stays f32.
    h = jnp.dot(x.astype(jnp.bfloat16), w1_ref[...],
                preferred_element_type=jnp.float32)
    h = jnp.maximum(h, 0.0)

    # FC2: bf16 operands again, f32 accumulation.
    y = jnp.dot(h.astype(jnp.bfloat16), w2_ref[...],
                preferred_element_type=jnp.float32)

    # Residual + LayerNorm (weight=1, bias=0, eps=1e-5) in f32, single-pass stats.
    y = y + x_f32
    mean = jnp.mean(y, axis=-1, keepdims=True)
    var = jnp.mean(y * y, axis=-1, keepdims=True) - mean * mean
    o_ref[...] = ((y - mean) * jax.lax.rsqrt(var + LN_EPS)).astype(o_ref.dtype)


def _round_up(n, m):
    return ((n + m - 1) // m) * m


@functools.partial(jax.jit, static_argnames=("tile_rows",))
def poswise_ffn(x, w1, w2, *, tile_rows=2048):
    """x: (batch, seq, d_model). w1: (d_model, d_ff). w2: (d_ff, d_model)."""
    batch, seq, dm = x.shape
    assert dm == d_model
    assert w1.shape == (d_model, d_ff) and w2.shape == (d_ff, d_model)

    M = batch * seq
    x2d = x.reshape(M, d_model)

    # bf16 weights: native MXU rate + half the weight HBM bytes. The x/out HBM
    # streams stay in x.dtype (re-casting them in the wrapper would just add an
    # extra un-hidden HBM pass).
    w1_k = w1.astype(jnp.bfloat16)
    w2_k = w2.astype(jnp.bfloat16)

    # Row tile: multiple of 16 (covers f32 sublane=8 and bf16 sublane=16). Aim for
    # >= 2 and an even number of grid steps (v7x: the single "parallel" axis is
    # what shards across the 2 TensorCores), capped by `tile_rows` for VMEM.
    tm_cap = max(16, _round_up(int(tile_rows), 16))
    n_steps = pl.cdiv(M, tm_cap)
    if M > 16:
        n_steps = max(n_steps, 2)
    if n_steps > 1 and n_steps % 2:
        n_steps += 1
    tm = max(16, _round_up(pl.cdiv(M, n_steps), 16))
    grid_m = pl.cdiv(M, tm)
    # No padding: Pallas masks the out-of-bounds tail of the last (ragged) block;
    # rows are fully independent, so the garbage tail never contaminates results.

    cost = pl.CostEstimate(
        flops=4 * M * d_model * d_ff + 8 * M * d_model,
        transcendentals=M,
        bytes_accessed=(2 * M * d_model * jnp.dtype(x.dtype).itemsize
                        + w1_k.size * 2 + w2_k.size * 2),
    )

    out2d = pl.pallas_call(
        ffn_kernel,
        out_shape=jax.ShapeDtypeStruct((M, d_model), x.dtype),
        grid_spec=pltpu.PrefetchScalarGridSpec(
            num_scalar_prefetch=0,
            grid=(grid_m,),
            in_specs=[
                pl.BlockSpec((tm, d_model), lambda i: (i, 0)),
                # Constant index_map -> fetched once, VMEM-resident across steps.
                pl.BlockSpec((d_model, d_ff), lambda i: (0, 0)),
                pl.BlockSpec((d_ff, d_model), lambda i: (0, 0)),
            ],
            out_specs=pl.BlockSpec((tm, d_model), lambda i: (i, 0)),
        ),
        compiler_params=pltpu.CompilerParams(
            # Row axis is fully independent -> shard across both TCs on v7x.
            dimension_semantics=("parallel",),
            # ~10 MiB live at tm=2048 f32; 32 MiB is safe on v5e/v6e/v7x.
            vmem_limit_bytes=32 * 1024 * 1024,
        ),
        cost_estimate=cost,
    )(x2d, w1_k, w2_k)

    return out2d.reshape(batch, seq, d_model)


if __name__ == "__main__":
    key = jax.random.PRNGKey(0)
    k_x, k_w1, k_w2, k_x2 = jax.random.split(key, 4)

    # Deterministic synthetic weights (nn.Linear layout, stored transposed).
    w1 = jax.random.normal(k_w1, (d_model, d_ff), dtype=jnp.float32) * (1.0 / d_model ** 0.5)
    w2 = jax.random.normal(k_w2, (d_ff, d_model), dtype=jnp.float32) * (1.0 / d_ff ** 0.5)

    def ref(x, w1, w2):
        h = jnp.maximum(x @ w1, 0.0)
        y = h @ w2 + x
        mu = jnp.mean(y, axis=-1, keepdims=True)
        var = jnp.mean((y - mu) ** 2, axis=-1, keepdims=True)
        return (y - mu) / jnp.sqrt(var + LN_EPS)

    # 1) Small shape consistent with the module's usage (batch=2, seq=8, d_model=128).
    batch, seq = 2, 8
    x = jax.random.normal(k_x, (batch, seq, d_model), dtype=jnp.float32)
    out = poswise_ffn(x, w1, w2)
    jax.block_until_ready(out)
    assert out.shape == (batch, seq, d_model)
    # bf16 MXU operands vs a pure-f32 reference -> loosened tolerance.
    assert jnp.allclose(out, ref(x, w1, w2), atol=5e-2, rtol=5e-2)

    # 2) Ragged multi-tile case: 4*300 = 1200 rows -> 2 balanced blocks (608 + 592),
    #    exercising the masked last block and the v7x-friendly even grid split.
    batch2, seq2 = 4, 300
    x2 = jax.random.normal(k_x2, (batch2, seq2, d_model), dtype=jnp.float32)
    out2 = poswise_ffn(x2, w1, w2)
    jax.block_until_ready(out2)
    assert out2.shape == (batch2, seq2, d_model)
    assert jnp.allclose(out2, ref(x2, w1, w2), atol=5e-2, rtol=5e-2)

    print("KERNEL_OK")
</pallas_src>

<mosaic_0001>
module attributes {stable_mosaic.version = 11 : i64} {
  func.func @ffn_kernel(%arg0: i32, %arg1: memref<16x128xf32, #tpu.memory_space<vmem>>, %arg2: memref<128x512xbf16, #tpu.memory_space<vmem>>, %arg3: memref<512x128xbf16, #tpu.memory_space<vmem>>, %arg4: memref<16x128xf32, #tpu.memory_space<vmem>>) attributes {dimension_semantics = [#tpu.dimension_semantics<parallel>], iteration_bounds = array<i64: 1>, scalar_prefetch = 0 : i64, scratch_operands = 0 : i64, tpu.core_type = #tpu.core_type<tc>, window_params = [{transform_indices = @transform_0, window_bounds = array<i64: 16, 128>}, {pipeline_mode = #tpu.pipeline_mode<synchronous>, transform_indices = @transform_1, window_bounds = array<i64: 128, 512>}, {pipeline_mode = #tpu.pipeline_mode<synchronous>, transform_indices = @transform_2, window_bounds = array<i64: 512, 128>}, {transform_indices = @transform_3, window_bounds = array<i64: 16, 128>}]} {
    %c0 = arith.constant 0 : index
    %c0_0 = arith.constant 0 : index
    %0 = vector.load %arg1[%c0, %c0_0] : memref<16x128xf32, #tpu.memory_space<vmem>>, vector<16x128xf32>
    %1 = arith.truncf %0 : vector<16x128xf32> to vector<16x128xbf16>
    %c0_1 = arith.constant 0 : index
    %c0_2 = arith.constant 0 : index
    %2 = vector.load %arg2[%c0_1, %c0_2] : memref<128x512xbf16, #tpu.memory_space<vmem>>, vector<128x512xbf16>
    %cst = arith.constant dense<0.000000e+00> : vector<16x512xf32>
    %3 = tpu.matmul %1, %2, %cst {dimension_numbers = #tpu.dot_dimension_numbers<[1], [0], [0], [1], [0, 0, 1, 1], [], []>} : vector<16x128xbf16>, vector<128x512xbf16>, vector<16x512xf32> -> vector<16x512xf32>
    %cst_3 = arith.constant 0.000000e+00 : f32
    %4 = vector.broadcast %cst_3 : f32 to vector<16x512xf32>
    %5 = arith.maximumf %3, %4 : vector<16x512xf32>
    %6 = arith.truncf %5 : vector<16x512xf32> to vector<16x512xbf16>
    %c0_4 = arith.constant 0 : index
    %c0_5 = arith.constant 0 : index
    %7 = vector.load %arg3[%c0_4, %c0_5] : memref<512x128xbf16, #tpu.memory_space<vmem>>, vector<512x128xbf16>
    %cst_6 = arith.constant dense<0.000000e+00> : vector<16x128xf32>
    %8 = tpu.matmul %6, %7, %cst_6 {dimension_numbers = #tpu.dot_dimension_numbers<[1], [0], [0], [1], [0, 0, 1, 1], [], []>} : vector<16x512xbf16>, vector<512x128xbf16>, vector<16x128xf32> -> vector<16x128xf32>
    %9 = arith.addf %8, %0 : vector<16x128xf32>
    %cst_7 = arith.constant dense<0.000000e+00> : vector<16xf32>
    %10 = vector.multi_reduction <add>, %9, %cst_7 [1] : vector<16x128xf32> to vector<16xf32>
    %11 = vector.shape_cast %10 : vector<16xf32> to vector<16x1xf32>
    %cst_8 = arith.constant 1.280000e+02 : f32
    %12 = vector.broadcast %cst_8 : f32 to vector<16x1xf32>
    %13 = arith.divf %11, %12 : vector<16x1xf32>
    %14 = arith.mulf %9, %9 : vector<16x128xf32>
    %cst_9 = arith.constant dense<0.000000e+00> : vector<16xf32>
    %15 = vector.multi_reduction <add>, %14, %cst_9 [1] : vector<16x128xf32> to vector<16xf32>
    %16 = vector.shape_cast %15 : vector<16xf32> to vector<16x1xf32>
    %cst_10 = arith.constant 1.280000e+02 : f32
    %17 = vector.broadcast %cst_10 : f32 to vector<16x1xf32>
    %18 = arith.divf %16, %17 : vector<16x1xf32>
    %19 = arith.mulf %13, %13 : vector<16x1xf32>
    %20 = arith.subf %18, %19 : vector<16x1xf32>
    %21 = vector.broadcast %13 : vector<16x1xf32> to vector<16x128xf32>
    %22 = arith.subf %9, %21 : vector<16x128xf32>
    %cst_11 = arith.constant 9.99999974E-6 : f32
    %23 = vector.broadcast %cst_11 : f32 to vector<16x1xf32>
    %24 = arith.addf %20, %23 : vector<16x1xf32>
    %25 = math.rsqrt %24 : vector<16x1xf32>
    %26 = vector.broadcast %25 : vector<16x1xf32> to vector<16x128xf32>
    %27 = arith.mulf %22, %26 : vector<16x128xf32>
    %c0_12 = arith.constant 0 : index
    %c0_13 = arith.constant 0 : index
    %28 = vector.load %arg4[%c0_12, %c0_13] : memref<16x128xf32, #tpu.memory_space<vmem>>, vector<16x128xf32>
    tpu.vector_store %arg4[%c0_12, %c0_13], %27 {strides = array<i32>} : memref<16x128xf32, #tpu.memory_space<vmem>>, vector<16x128xf32>,
    return
  }
  func.func @transform_0(%arg0: i32) -> (i32, i32) {
    %c0_i32 = arith.constant 0 : i32
    %c0_i32_0 = arith.constant 0 : i32
    return %arg0, %c0_i32 : i32, i32
  }
  func.func @transform_1(%arg0: i32) -> (i32, i32) {
    %c0_i32 = arith.constant 0 : i32
    %c0_i32_0 = arith.constant 0 : i32
    %c0_i32_1 = arith.constant 0 : i32
    return %c0_i32, %c0_i32_0 : i32, i32
  }
  func.func @transform_2(%arg0: i32) -> (i32, i32) {
    %c0_i32 = arith.constant 0 : i32
    %c0_i32_0 = arith.constant 0 : i32
    %c0_i32_1 = arith.constant 0 : i32
    return %c0_i32, %c0_i32_0 : i32, i32
  }
  func.func @transform_3(%arg0: i32) -> (i32, i32) {
    %c0_i32 = arith.constant 0 : i32
    %c0_i32_0 = arith.constant 0 : i32
    return %arg0, %c0_i32 : i32, i32
  }
}

</mosaic_0001>

<bundles_post_ra>
// kernel: poswise_ffn.1
= control target key start
LH: loop header
LB: loop body
LE: loop exit
PB: predicated region body
PF: predicated region fallthrough
CT: control target
= control target key end

     0   :  { %s1346_s0 = inlined_call_operand.vmem [shape: f32[16,128], index: 0, kind: input, shape index: {}]   ;;  %s1347_s1 = inlined_call_operand.vmem [shape: bf16[128,512], index: 1, kind: input, shape index: {}]   ;;  %s1348_s2 = inlined_call_operand.vmem [shape: bf16[512,128], index: 2, kind: input, shape index: {}]   ;;  %s1349_s3 = inlined_call_operand.hbm [shape: f32[16,128], index: 3, kind: output, shape index: {}]  }
   0x1   :  { %v775_v0 = vld [vmem:[%s1347_s1 + $0xe0] sm:$0xf]  ;;  %v947_v1 = vld [vmem:[%s1347_s1 + $0xec] sm:$0xf0]  ;;  %v945_v2 = vld [vmem:[%s1347_s1 + $0xe4] sm:$0xf] }
   0x2   :  { %v776_v3 = vor.u32 %v947_v1, %v775_v0  ;;  %v777_v4 = vld [vmem:[%s1347_s1 + $0xf0] sm:$0xf0]  ;;  %v783_v5 = vld [vmem:[%s1347_s1 + $0xe8] sm:$0xf]  ;;  %v948_v6 = vld [vmem:[%s1347_s1 + $0xf4] sm:$0xf0] }
   0x3   :  { %v780_v7 = vor.u32 %v945_v2, %v777_v4  ;;  %v784_v8 = vor.u32 %v948_v6, %v783_v5  ;;  %v946_v9 = vld [vmem:[%s1347_s1 + $0xec] sm:$0xf]  ;;  %v785_v10 = vld [vmem:[%s1347_s1 + $0xf8] sm:$0xf0]  ;;  %v759_v11 = vld [vmem:[%s1347_s1 + $0xc0] sm:$0xf] }
   0x4   :  { %210 = vmatpush.bf16.msra.mxu0 %v776_v3  ;;  %v788_v12 = vor.u32 %v946_v9, %v785_v10  ;;  %v943_v13 = vld [vmem:[%s1347_s1 + $0xcc] sm:$0xf0]  ;;  %v941_v14 = vld [vmem:[%s1347_s1 + $0xc4] sm:$0xf]  ;;  %v761_v15 = vld [vmem:[%s1347_s1 + $0xd0] sm:$0xf0] }
   0x5   :  { %224 = vmatpush.bf16.msra.mxu1 %v780_v7  ;;  %238 = vmatpush.bf16.msra.mxu2 %v784_v8  ;;  %v760_v16 = vor.u32 %v943_v13, %v759_v11  ;;  %v764_v17 = vor.u32 %v941_v14, %v761_v15  ;;  %v767_v18 = vld [vmem:[%s1347_s1 + $0xc8] sm:$0xf]  ;;  %v944_v19 = vld [vmem:[%s1347_s1 + $0xd4] sm:$0xf0]  ;;  %v942_v20 = vld [vmem:[%s1347_s1 + $0xcc] sm:$0xf] }
   0x6   :  { %252 = vmatpush.bf16.msra.mxu3 %v788_v12  ;;  %v768_v21 = vor.u32 %v944_v19, %v767_v18  ;;  %v769_v22 = vld [vmem:[%s1347_s1 + $0xd8] sm:$0xf0]  ;;  %v743_v23 = vld [vmem:[%s1347_s1 + $0xa0] sm:$0xf]  ;;  %v939_v24 = vld [vmem:[%s1347_s1 + $0xac] sm:$0xf0] }
   0x7   :  { %v772_v25 = vor.u32 %v942_v20, %v769_v22  ;;  %v937_v26 = vld [vmem:[%s1347_s1 + $0xa4] sm:$0xf]  ;;  %v745_v27 = vld [vmem:[%s1347_s1 + $0xb0] sm:$0xf0]  ;;  %v751_v28 = vld [vmem:[%s1347_s1 + $0xa8] sm:$0xf]  ;;  %v744_v29 = vor.u32 %v939_v24, %v743_v23 }
   0x8   :  { %211 = vmatpush.bf16.msra.mxu0 %v760_v16  ;;  %v940_v30 = vld [vmem:[%s1347_s1 + $0xb4] sm:$0xf0]  ;;  %v938_v31 = vld [vmem:[%s1347_s1 + $0xac] sm:$0xf]  ;;  %v753_v32 = vld [vmem:[%s1347_s1 + $0xb8] sm:$0xf0]  ;;  %v748_v33 = vor.u32 %v937_v26, %v745_v27 }
   0x9   :  { %225 = vmatpush.bf16.msra.mxu1 %v764_v17  ;;  %239 = vmatpush.bf16.msra.mxu2 %v768_v21  ;;  %v752_v34 = vor.u32 %v940_v30, %v751_v28  ;;  %v727_v35 = vld [vmem:[%s1347_s1 + $0x80] sm:$0xf]  ;;  %v935_v36 = vld [vmem:[%s1347_s1 + $0x8c] sm:$0xf0]  ;;  %v933_v37 = vld [vmem:[%s1347_s1 + $0x84] sm:$0xf]  ;;  %v756_v38 = vor.u32 %v938_v31, %v753_v32 }
   0xa   :  { %253 = vmatpush.bf16.msra.mxu3 %v772_v25  ;;  %v729_v39 = vld [vmem:[%s1347_s1 + $0x90] sm:$0xf0]  ;;  %v735_v40 = vld [vmem:[%s1347_s1 + $0x88] sm:$0xf]  ;;  %v936_v41 = vld [vmem:[%s1347_s1 + $0x94] sm:$0xf0]  ;;  %v728_v44 = vor.u32 %v935_v36, %v727_v35 }
   0xb   :  { %v934_v42 = vld [vmem:[%s1347_s1 + $0x8c] sm:$0xf]  ;;  %v737_v43 = vld [vmem:[%s1347_s1 + $0x98] sm:$0xf0]  ;;  %v732_v45 = vor.u32 %v933_v37, %v729_v39  ;;  %v736_v46 = vor.u32 %v936_v41, %v735_v40  ;;  %v711_v47 = vld [vmem:[%s1347_s1 + $0x60] sm:$0xf] }
   0xc   :  { %212 = vmatpush.bf16.msra.mxu0 %v744_v29  ;;  %v931_v48 = vld [vmem:[%s1347_s1 + $0x6c] sm:$0xf0]  ;;  %v929_v49 = vld [vmem:[%s1347_s1 + $0x64] sm:$0xf]  ;;  %v740_v50 = vor.u32 %v934_v42, %v737_v43  ;;  %v713_v51 = vld [vmem:[%s1347_s1 + $0x70] sm:$0xf0] }
   0xd   :  { %226 = vmatpush.bf16.msra.mxu1 %v748_v33  ;;  %240 = vmatpush.bf16.msra.mxu2 %v752_v34  ;;  %v719_v52 = vld [vmem:[%s1347_s1 + $0x68] sm:$0xf]  ;;  %v932_v53 = vld [vmem:[%s1347_s1 + $0x74] sm:$0xf0]  ;;  %v930_v54 = vld [vmem:[%s1347_s1 + $0x6c] sm:$0xf]  ;;  %v712_v56 = vor.u32 %v931_v48, %v711_v47  ;;  %v716_v57 = vor.u32 %v929_v49, %v713_v51 }
   0xe   :  { %254 = vmatpush.bf16.msra.mxu3 %v756_v38  ;;  %v721_v55 = vld [vmem:[%s1347_s1 + $0x78] sm:$0xf0]  ;;  %v720_v58 = vor.u32 %v932_v53, %v719_v52  ;;  %v695_v59 = vld [vmem:[%s1347_s1 + $0x40] sm:$0xf]  ;;  %v927_v60 = vld [vmem:[%s1347_s1 + $0x4c] sm:$0xf0] }
   0xf   :  { %v925_v61 = vld [vmem:[%s1347_s1 + $0x44] sm:$0xf]  ;;  %v724_v62 = vor.u32 %v930_v54, %v721_v55  ;;  %v697_v63 = vld [vmem:[%s1347_s1 + $0x50] sm:$0xf0]  ;;  %v703_v0 = vld [vmem:[%s1347_s1 + $0x48] sm:$0xf]  ;;  %v696_v4 = vor.u32 %v927_v60, %v695_v59 }
  0x10   :  { %213 = vmatpush.bf16.msra.mxu0 %v728_v44  ;;  %v928_v1 = vld [vmem:[%s1347_s1 + $0x54] sm:$0xf0]  ;;  %v926_v2 = vld [vmem:[%s1347_s1 + $0x4c] sm:$0xf]  ;;  %v705_v3 = vld [vmem:[%s1347_s1 + $0x58] sm:$0xf0]  ;;  %v700_v5 = vor.u32 %v925_v61, %v697_v63 }
  0x11   :  { %227 = vmatpush.bf16.msra.mxu1 %v732_v45  ;;  %241 = vmatpush.bf16.msra.mxu2 %v736_v46  ;;  %v704_v6 = vor.u32 %v928_v1, %v703_v0  ;;  %v679_v7 = vld [vmem:[%s1347_s1 + $0x20] sm:$0xf]  ;;  %v923_v8 = vld [vmem:[%s1347_s1 + $0x2c] sm:$0xf0]  ;;  %v921_v9 = vld [vmem:[%s1347_s1 + $0x24] sm:$0xf]  ;;  %v708_v10 = vor.u32 %v926_v2, %v705_v3 }
  0x12   :  { %255 = vmatpush.bf16.msra.mxu3 %v740_v50  ;;  %v681_v11 = vld [vmem:[%s1347_s1 + $0x30] sm:$0xf0]  ;;  %v687_v12 = vld [vmem:[%s1347_s1 + $0x28] sm:$0xf]  ;;  %v924_v13 = vld [vmem:[%s1347_s1 + $0x34] sm:$0xf0]  ;;  %v680_v16 = vor.u32 %v923_v8, %v679_v7 }
  0x13   :  { %v922_v14 = vld [vmem:[%s1347_s1 + $0x2c] sm:$0xf]  ;;  %v689_v15 = vld [vmem:[%s1347_s1 + $0x38] sm:$0xf0]  ;;  %v684_v17 = vor.u32 %v921_v9, %v681_v11  ;;  %v688_v18 = vor.u32 %v924_v13, %v687_v12  ;;  %v663_v19 = vld [vmem:[%s1347_s1] sm:$0xf] }
  0x14   :  { %214 = vmatpush.bf16.msra.mxu0 %v712_v56  ;;  %v919_v20 = vld [vmem:[%s1347_s1 + $0xc] sm:$0xf0]  ;;  %v917_v21 = vld [vmem:[%s1347_s1 + $0x4] sm:$0xf]  ;;  %v692_v22 = vor.u32 %v922_v14, %v689_v15  ;;  %v665_v23 = vld [vmem:[%s1347_s1 + $0x10] sm:$0xf0] }
  0x15   :  { %228 = vmatpush.bf16.msra.mxu1 %v716_v57  ;;  %242 = vmatpush.bf16.msra.mxu2 %v720_v58  ;;  %v671_v24 = vld [vmem:[%s1347_s1 + $0x8] sm:$0xf]  ;;  %v920_v25 = vld [vmem:[%s1347_s1 + $0x14] sm:$0xf0]  ;;  %v918_v26 = vld [vmem:[%s1347_s1 + $0xc] sm:$0xf]  ;;  %v664_v28 = vor.u32 %v919_v20, %v663_v19 }
  0x16   :  { %256 = vmatpush.bf16.msra.mxu3 %v724_v62  ;;  %v673_v27 = vld [vmem:[%s1347_s1 + $0x18] sm:$0xf0]  ;;  %v1236_v29 = vld [vmem:[%s1346_s0] sm:$0xff]  ;;  %v1241_v30 = vld [vmem:[%s1346_s0 + $0x8] sm:$0xff] }
  0x18   :  { %215 = vmatpush.bf16.msra.mxu0 %v696_v4 }
  0x19   :  { %229 = vmatpush.bf16.msra.mxu1 %v700_v5  ;;  %243 = vmatpush.bf16.msra.mxu2 %v704_v6 }
  0x1a   :  { %257 = vmatpush.bf16.msra.mxu3 %v708_v10 }
  0x1c   :  { %216 = vmatpush.bf16.msra.mxu0 %v680_v16 }
  0x1d   :  { %8 = vsyncpa [#allocation3], 0  ;;  %230 = vmatpush.bf16.msra.mxu1 %v684_v17  ;;  %244 = vmatpush.bf16.msra.mxu2 %v688_v18  ;;  %v668_v31 = vor.u32 %v917_v21, %v665_v23  ;;  %v672_v32 = vor.u32 %v920_v25, %v671_v24  ;;  %v676_v33 = vor.u32 %v918_v26, %v673_v27  ;;  %v956_v34 = vld [vmem:[%s1348_s2 + $0x38] sm:$0xff]  ;;  %v955_v38 = vld [vmem:[%s1348_s2 + $0x30] sm:$0xff]  ;;  %s649_s16 = sshll.u32 %s1349_s3, 4  ;;  %s1019_s17 = smov 128   ;;  %s650_s16 = int_to_ptr.hbm [resolvable:$true] %s649_s16 }
  0x1e   :  { %258 = vmatpush.bf16.msra.mxu3 %v692_v22  ;;  %v17_v35 = vpack.c.bf16 %v1241_v30, %v1236_v29  ;;  %v964_v36 = vld [vmem:[%s1348_s2 + $0x78] sm:$0xff]  ;;  %v963_v40 = vld [vmem:[%s1348_s2 + $0x70] sm:$0xff]  ;;  %v954_v42 = vld [vmem:[%s1348_s2 + $0x28] sm:$0xff]  ;;  %s1020_s18 = smov 8  }
  0x1f   :  { %v972_v37 = vld [vmem:[%s1348_s2 + $0xb8] sm:$0xff]  ;;  %v971_v41 = vld [vmem:[%s1348_s2 + $0xb0] sm:$0xff]  ;;  %v962_v44 = vld [vmem:[%s1348_s2 + $0x68] sm:$0xff] }
  0x20   :  { %217 = vmatpush.bf16.msra.mxu0 %v664_v28  ;;  %v980_v39 = vld [vmem:[%s1348_s2 + $0xf8] sm:$0xff]  ;;  %v979_v43 = vld [vmem:[%s1348_s2 + $0xf0] sm:$0xff]  ;;  %v970_v45 = vld [vmem:[%s1348_s2 + $0xa8] sm:$0xff] }
  0x21   :  { %231 = vmatpush.bf16.msra.mxu1 %v668_v31  ;;  %245 = vmatpush.bf16.msra.mxu2 %v672_v32  ;;  %v953_v46 = vld [vmem:[%s1348_s2 + $0x20] sm:$0xff]  ;;  %v978_v47 = vld [vmem:[%s1348_s2 + $0xe8] sm:$0xff]  ;;  %v952_v49 = vld [vmem:[%s1348_s2 + $0x18] sm:$0xff] }
  0x22   :  { %259 = vmatpush.bf16.msra.mxu3 %v676_v33  ;;  %v961_v48 = vld [vmem:[%s1348_s2 + $0x60] sm:$0xff]  ;;  %v960_v50 = vld [vmem:[%s1348_s2 + $0x58] sm:$0xff]  ;;  %v951_v53 = vld [vmem:[%s1348_s2 + $0x10] sm:$0xff] }
  0x23   :  { %218 = vmatmul.bf16.vlgmr.msra.gmra.mxu0 %v17_v35  ;;  %v969_v51 = vld [vmem:[%s1348_s2 + $0xa0] sm:$0xff]  ;;  %v959_v54 = vld [vmem:[%s1348_s2 + $0x50] sm:$0xff]  ;;  %v968_v55 = vld [vmem:[%s1348_s2 + $0x98] sm:$0xff] }
  0x24   :  { %534 = vmatpush.bf16.msrb.mxu0 %v956_v34  ;;  %232 = vmatmul.bf16.vlgmr.msra.gmra.mxu1 %v17_v35  ;;  %v977_v52 = vld [vmem:[%s1348_s2 + $0xe0] sm:$0xff]  ;;  %v976_v56 = vld [vmem:[%s1348_s2 + $0xd8] sm:$0xff]  ;;  %v950_v57 = vld [vmem:[%s1348_s2 + $0x8] sm:$0xff] }
  0x25   :  { %548 = vmatpush.bf16.msrb.mxu1 %v964_v36  ;;  %246 = vmatmul.bf16.vlgmr.msra.gmra.mxu2 %v17_v35  ;;  %v958_v58 = vld [vmem:[%s1348_s2 + $0x48] sm:$0xff]  ;;  %v967_v59 = vld [vmem:[%s1348_s2 + $0x90] sm:$0xff]  ;;  %v949_v61 = vld [vmem:[%s1348_s2] sm:$0xff] }
  0x26   :  { %260 = vmatmul.bf16.vlgmr.msra.gmra.mxu3 %v17_v35  ;;  %562 = vmatpush.bf16.msrb.mxu2 %v972_v37  ;;  %v975_v60 = vld [vmem:[%s1348_s2 + $0xd0] sm:$0xff]  ;;  %v957_v62 = vld [vmem:[%s1348_s2 + $0x40] sm:$0xff]  ;;  %v966_v63 = vld [vmem:[%s1348_s2 + $0x88] sm:$0xff] }
  0x27   :  { %576 = vmatpush.bf16.msrb.mxu3 %v980_v39  ;;  %v974_v0 = vld [vmem:[%s1348_s2 + $0xc8] sm:$0xff]  ;;  %v965_v1 = vld [vmem:[%s1348_s2 + $0x80] sm:$0xff] }
  0x28   :  { %535 = vmatpush.bf16.msrb.mxu0 %v955_v38  ;;  %v973_v2 = vld [vmem:[%s1348_s2 + $0xc0] sm:$0xff]  ;;  %s1018_s2 = smov [#allocation2]  }
  0x29   :  { %549 = vmatpush.bf16.msrb.mxu1 %v963_v40  ;;  %s647_s13 = sshll.u32 %s1018_s2, 4  ;;  %s648_s13 = int_to_ptr.vmem [resolvable:$true] %s647_s13 }
  0x2a   :  { %563 = vmatpush.bf16.msrb.mxu2 %v971_v41 }
  0x2b   :  { %577 = vmatpush.bf16.msrb.mxu3 %v979_v43 }
  0x2c   :  { %536 = vmatpush.bf16.msrb.mxu0 %v954_v42  ;;  %v1017_v42 = vmov 128.0  }
  0x2d   :  { %550 = vmatpush.bf16.msrb.mxu1 %v962_v44  ;;  %985 = vrcp.f32 %v1017_v42 }
  0x2e   :  { %564 = vmatpush.bf16.msrb.mxu2 %v970_v45 }
  0x2f   :  { %578 = vmatpush.bf16.msrb.mxu3 %v978_v47 }
  0x30   :  { %537 = vmatpush.bf16.msrb.mxu0 %v953_v46 }
  0x31   :  { %551 = vmatpush.bf16.msrb.mxu1 %v961_v48 }
  0x32   :  { %565 = vmatpush.bf16.msrb.mxu2 %v969_v51 }
  0x33   :  { %579 = vmatpush.bf16.msrb.mxu3 %v977_v52  ;;  %v986_v43 = vpop.eup %985 }
  0x34   :  { %538 = vmatpush.bf16.msrb.mxu0 %v952_v49  ;;  %v595_v44 = vmul.f32 128.0, %v986_v43  ;;  %vm599_vm0 = vweird.f32 %v986_v43 }
  0x35   :  { %552 = vmatpush.bf16.msrb.mxu1 %v960_v50 }
  0x36   :  { %566 = vmatpush.bf16.msrb.mxu2 %v968_v55  ;;  %v596_v45 = vsub.f32 1.0, %v595_v44 }
  0x37   :  { %580 = vmatpush.bf16.msrb.mxu3 %v976_v56 }
  0x38   :  { %539 = vmatpush.bf16.msrb.mxu0 %v951_v53  ;;  %v597_v46 = vmul.f32 %v986_v43, %v596_v45 }
  0x39   :  { %553 = vmatpush.bf16.msrb.mxu1 %v959_v54 }
  0x3a   :  { %567 = vmatpush.bf16.msrb.mxu2 %v967_v59 }
  0x3b   :  { %581 = vmatpush.bf16.msrb.mxu3 %v975_v60 }
  0x3c   :  { %540 = vmatpush.bf16.msrb.mxu0 %v950_v57 }
  0x3d   :  { %554 = vmatpush.bf16.msrb.mxu1 %v958_v58 }
  0x3e   :  { %568 = vmatpush.bf16.msrb.mxu2 %v966_v63 }
  0x3f   :  { %582 = vmatpush.bf16.msrb.mxu3 %v974_v0 }
  0x40   :  { %541 = vmatpush.bf16.msrb.mxu0 %v949_v61 }
  0x41   :  { %555 = vmatpush.bf16.msrb.mxu1 %v957_v62 }
  0x42   :  { %569 = vmatpush.bf16.msrb.mxu2 %v965_v1 }
  0x43   :  { %583 = vmatpush.bf16.msrb.mxu3 %v973_v2 }
  0xa0   :  { %v219_v3 = vpop.f32.mrf.mxu0 }
  0xa1   :  { %v233_v4 = vpop.f32.mrf.mxu1  ;;  %v266_v5 = vmax.f32 %v219_v3, 0.0 }
  0xa2   :  { %v267_v7 = vmax.f32 %v233_v4, 0.0 }
  0xa8   :  { %v247_v6 = vpop.f32.mrf.mxu2  ;;  %v221_v9 = vpop.f32.mrf.mxu0 }
  0xa9   :  { %v261_v8 = vpop.f32.mrf.mxu3  ;;  %v270_v10 = vmax.f32 %v221_v9, 0.0  ;;  %v235_v11 = vpop.f32.mrf.mxu1  ;;  %v268_v16 = vmax.f32 %v247_v6, 0.0 }
  0xaa   :  { %v271_v12 = vmax.f32 %v235_v11, 0.0  ;;  %v269_v19 = vmax.f32 %v261_v8, 0.0 }
  0xab   :  { %v274_v13 = vpack.c.bf16 %v270_v10, %v266_v5 }
  0xac   :  { %v275_v14 = vpack.c.bf16 %v271_v12, %v267_v7 }
  0xad   :  { %542 = vmatmul.bf16.vlgmr.msrb.gmra.mxu0 %v274_v13 }
  0xae   :  { %556 = vmatmul.bf16.vlgmr.msrb.gmra.mxu1 %v275_v14 }
  0xb0   :  { %v249_v15 = vpop.f32.mrf.mxu2 }
  0xb1   :  { %v272_v17 = vmax.f32 %v249_v15, 0.0  ;;  %v263_v18 = vpop.f32.mrf.mxu3 }
  0xb2   :  { %v273_v20 = vmax.f32 %v263_v18, 0.0 }
  0xb3   :  { %v276_v21 = vpack.c.bf16 %v272_v17, %v268_v16 }
  0xb4   :  { %v277_v22 = vpack.c.bf16 %v273_v20, %v269_v19 }
  0xb5   :  { %570 = vmatmul.bf16.vlgmr.msrb.gmra.mxu2 %v276_v21 }
  0xb6   :  { %584 = vmatmul.bf16.vlgmr.msrb.gmra.mxu3 %v277_v22 }
 0x12a   :  { %v543_v23 = vpop.f32.mrf.mxu0 }
 0x12b   :  { %v544_v24 = vadd.f32 %v543_v23, %v1236_v29  ;;  %v557_v25 = vpop.f32.mrf.mxu1 }
 0x12d   :  { %v558_v26 = vadd.f32 %v557_v25, %v544_v24 }
 0x132   :  { %v545_v27 = vpop.f32.mrf.mxu0 }
 0x133   :  { %v546_v33 = vadd.f32 %v545_v27, %v1241_v30  ;;  %v559_v36 = vpop.f32.mrf.mxu1  ;;  %v598_v30 = vadd.f32 %v986_v43, %v597_v46 }
 0x135   :  { %v560_v37 = vadd.f32 %v559_v36, %v546_v33  ;;  %v600_v47 = vsel %vm599_vm0, %v986_v43, %v598_v30 }
 0x138   :  { %v571_v28 = vpop.f32.mrf.mxu2 }
 0x139   :  { %v572_v31 = vadd.f32 %v571_v28, %v558_v26  ;;  %v585_v32 = vpop.f32.mrf.mxu3 }
 0x13b   :  { %v586_v34 = vadd.f32 %v585_v32, %v572_v31 }
 0x13d   :  { %590 = vadd.xlane.f32.xlu0 %v586_v34  ;;  %v603_v35 = vmul.f32 %v586_v34, %v586_v34 }
 0x13f   :  { %605 = vadd.xlane.f32.xlu1 %v603_v35 }
 0x140   :  { %v573_v38 = vpop.f32.mrf.mxu2 }
 0x141   :  { %v574_v39 = vadd.f32 %v573_v38, %v560_v37  ;;  %v587_v40 = vpop.f32.mrf.mxu3 }
 0x143   :  { %v588_v41 = vadd.f32 %v587_v40, %v574_v39 }
 0x145   :  { %592 = vadd.xlane.f32.xlu0 %v588_v41  ;;  %v604_v29 = vmul.f32 %v588_v41, %v588_v41 }
 0x147   :  { %607 = vadd.xlane.f32.xlu1 %v604_v29 }
 0x1b0   :  { %v591_v48 = vpop.xlane.xlu0 %590 }
 0x1b1   :  { %v601_v49 = vmul.f32 %v600_v47, %v591_v48 }
 0x1b2   :  { %v606_v50 = vpop.xlane.xlu1 %605 }
 0x1b3   :  { %v611_v51 = vmul.f32 %v601_v49, %v601_v49  ;;  %v609_v52 = vmul.f32 %v606_v50, %v600_v47  ;;  %v615_v6 = vsub.f32 %v586_v34, %v601_v49 }
 0x1b5   :  { %v613_v53 = vsub.f32 %v609_v52, %v611_v51 }
 0x1b7   :  { %v617_v54 = vadd.f32 1e-05, %v613_v53 }
 0x1b8   :  { %v593_v55 = vpop.xlane.xlu0 %592 }
 0x1b9   :  { %987 = vrsqrt.f32 %v617_v54  ;;  %v602_v56 = vmul.f32 %v600_v47, %v593_v55  ;;  %vm625_vm2 = vweird.f32 %v617_v54 }
 0x1ba   :  { %v608_v57 = vpop.xlane.xlu1 %607 }
 0x1bb   :  { %v612_v58 = vmul.f32 %v602_v56, %v602_v56  ;;  %v610_v59 = vmul.f32 %v608_v57, %v600_v47  ;;  %v616_v13 = vsub.f32 %v588_v41, %v602_v56 }
 0x1bd   :  { %v614_v60 = vsub.f32 %v610_v59, %v612_v58 }
 0x1bf   :  { %v988_v61 = vpop.eup %987  ;;  %v618_v62 = vadd.f32 1e-05, %v614_v60 }
 0x1c0   :  { %v620_v63 = vmul.f32 %v988_v61, %v617_v54  ;;  %vm626_vm1 = vweird.f32 %v988_v61 }
 0x1c1   :  { %989 = vrsqrt.f32 %v618_v62  ;;  %vm627_vm3 = vmor %vm625_vm2, %vm626_vm1  ;;  %vm635_vm5 = vweird.f32 %v618_v62 }
 0x1c2   :  { %v621_v0 = vmul.f32 %v988_v61, %v620_v63 }
 0x1c4   :  { %v622_v1 = vmul.f32 0.5, %v621_v0 }
 0x1c6   :  { %v623_v2 = vsub.f32 1.5, %v622_v1 }
 0x1c7   :  { %v990_v3 = vpop.eup %989 }
 0x1c8   :  { %v624_v4 = vmul.f32 %v988_v61, %v623_v2  ;;  %v630_v5 = vmul.f32 %v990_v3, %v618_v62  ;;  %vm636_vm4 = vweird.f32 %v990_v3 }
 0x1c9   :  { %vm637_vm6 = vmor %vm635_vm5, %vm636_vm4 }
 0x1ca   :  { %v628_v7 = vsel %vm627_vm3, %v988_v61, %v624_v4  ;;  %v631_v8 = vmul.f32 %v990_v3, %v630_v5 }
 0x1cb   :  { %v639_v9 = vmul.f32 %v628_v7, %v615_v6 }
 0x1cc   :  { %v632_v10 = vmul.f32 0.5, %v631_v8 }
 0x1cd   :  { %641 = vst [vmem:[#allocation2] sm:$0xff] %v639_v9 }
 0x1ce   :  { %v633_v11 = vsub.f32 1.5, %v632_v10 }
 0x1d0   :  { %v634_v12 = vmul.f32 %v990_v3, %v633_v11 }
 0x1d2   :  { %v638_v14 = vsel %vm637_vm6, %v990_v3, %v634_v12 }
 0x1d3   :  { %v640_v15 = vmul.f32 %v638_v14, %v616_v13 }
 0x1d5   :  { %642 = vst [vmem:[#allocation2 + $0x8] sm:$0xff] %v640_v15 }
 0x1d6   :  { %655 = dma.vmem_to_hbm [thread:$0]  %s648_s13, 256, %s650_s16, [#allocation3], %s1019_s17, %s1019_s17, %s1020_s18  }
 0x1d7   :  { %1015 = dma.done.wait [#allocation3], 256  }
 0x1d8   :  { %1016 = vsyncadd [#allocation3], 4294967040 }
 0x1d9   :  { %660 = vsyncpa [#allocation3], 1 }

</bundles_post_ra>
